<compile_context>
chip_gen: v6e
topology: v6e:2x2x1
jax: 0.10.0
libtpu: 0.0.40
codegen_flags: <defaults>
</compile_context>

<pallas_src>
import jax
import jax.numpy as jnp
from jax.experimental import pallas as pl
from jax.experimental.pallas import tpu as pltpu


def _round_up(n, m):
    return ((n + m - 1) // m) * m


# --------------------------------------------------------------------------------------
# Kernel
# --------------------------------------------------------------------------------------
def classblock_kernel(x_ref, w1_ref, b1_ref, w2_ref, b2_ref, out_ref, f_ref):
    # ---- add_block: (BN-folded) Linear -> LeakyReLU(0.1) -> Dropout(identity in eval) ----
    x = x_ref[...].astype(jnp.bfloat16)                                        # no-op if already bf16
    h = jnp.dot(x, w1_ref[...], preferred_element_type=jnp.float32)           # (TB, NBp) f32 acc
    h = h + b1_ref[...]                                                        # (1, NBp) broadcast
    h = jnp.where(h >= 0.0, h, 0.1 * h)                                        # LeakyReLU(0.1)
    # TODO(synk): Dropout(p=0.25) is the identity in eval mode; training-mode mask not emitted.
    f_ref[...] = h.astype(f_ref.dtype)

    # ---- classifier: Linear (lane-dense padded class dim) -> Sigmoid ----
    logits = jnp.dot(h.astype(w2_ref.dtype), w2_ref[...],
                     preferred_element_type=jnp.float32)                       # (TB, Cp) f32
    logits = logits + b2_ref[...]
    # EUP exp + approx reciprocal; ~2^-12 rel. error (swap approx=False if calibration cares).
    sig = pl.reciprocal(1.0 + jnp.exp(-logits), approx=True)
    out_ref[...] = sig.astype(out_ref.dtype)


# --------------------------------------------------------------------------------------
# One-time weight preparation (keep this OFF the per-call path)
# --------------------------------------------------------------------------------------
def prepare_params(params, *, eps=1e-5):
    """Fold eval-mode BatchNorm1d into the bottleneck Linear, zero-pad every weight/bias to
    lane-dense (multiples of 128) shapes, and cast matmul weights to bf16.

    Call once and reuse the result for every forward call: this keeps the BN fold and the
    read+write passes over W1/W2 out of the per-call HBM traffic.
    """
    D, NB = params["w1"].shape
    C = params["w2"].shape[1]

    scale = params["gamma"] * jax.lax.rsqrt(params["running_var"] + eps)        # (1, NB)
    w1 = params["w1"] * scale                                                   # (D, NB)
    b1 = (params["b1"] - params["running_mean"]) * scale + params["beta"]       # (1, NB)

    Dp = _round_up(D, 128)
    NBp = _round_up(NB, 128)
    Cp = _round_up(C, 128)

    w1p = jnp.zeros((Dp, NBp), jnp.bfloat16).at[:D, :NB].set(w1.astype(jnp.bfloat16))
    b1p = jnp.zeros((1, NBp), jnp.float32).at[:, :NB].set(b1.astype(jnp.float32))
    w2p = jnp.zeros((NBp, Cp), jnp.bfloat16).at[:NB, :C].set(params["w2"].astype(jnp.bfloat16))
    b2p = jnp.zeros((1, Cp), jnp.float32).at[:, :C].set(params["b2"].astype(jnp.float32))

    return dict(w1p=w1p, b1p=b1p, w2p=w2p, b2p=b2p, dims=(D, NB, C))


# --------------------------------------------------------------------------------------
# Tiling / VMEM heuristics
# --------------------------------------------------------------------------------------
def _choose_batch_tile(B, batch_tile):
    """Pick a bf16-friendly batch tile (multiple of 16) that (a) minimizes padded rows and
    (b) yields >= 2 grid steps when possible (v7x megacore sharding + pipeline overlap)."""
    batch_tile = max(16, batch_tile - batch_tile % 16)
    B16 = _round_up(B, 16)
    if B16 <= batch_tile:
        # Medium batch: split into two equal tiles (no extra padding) so both v7x TensorCores
        # get work; tiny batches run as a single un-gridded tile.
        if B16 >= 32 and (B16 // 2) % 16 == 0:
            return B16 // 2, B16
        return B16, B16
    # Large batch: pick from lane-friendly tile sizes, minimizing padded rows; ties resolve to
    # the larger tile (fewer grid steps, longer DMA bursts — raise batch_tile to 512 on v5e/v6e).
    best_tb, best_bp = None, None
    for tb in (512, 384, 256, 128):
        if tb > batch_tile:
            continue
        bp = _round_up(B, tb)
        if best_bp is None or bp < best_bp:
            best_tb, best_bp = tb, bp
    if best_tb is None:
        best_tb, best_bp = batch_tile, _round_up(B, batch_tile)
    return best_tb, best_bp


def _vmem_limit_bytes(TB, Dp, NBp, Cp, x_isz, f_isz, o_isz):
    """Scoped-VMEM limit from the real footprint (v7x has only 64 MiB/TC of physical VMEM)."""
    io_tiles = 2 * TB * (Dp * x_isz + NBp * f_isz + Cp * o_isz)        # double-buffered x/f/out tiles
    weights = 2 * (2 * (Dp * NBp + NBp * Cp) + 4 * (NBp + Cp))         # bf16 W + f32 b (x2 buffers)
    compute = 2 * TB * (NBp + Cp) * 4                                  # f32 h / logits intermediates
    total = io_tiles + weights + compute
    return max(16 << 20, min(100 << 20, int(total * 1.5) + (4 << 20)))


# --------------------------------------------------------------------------------------
# Forward wrapper
# --------------------------------------------------------------------------------------
def classblock_forward(x, prepared, *, batch_tile=256,
                       feature_dtype=jnp.float32, out_dtype=jnp.float32):
    """Eval-mode ClassBlock forward. `prepared` comes from prepare_params().

    feature_dtype/out_dtype can be set to jnp.bfloat16 to halve the f/out HBM write streams
    on the mem-bound v6e/v7x path if downstream retrieval tolerates it.
    """
    B, D = x.shape
    Dref, NB, C = prepared["dims"]
    assert D == Dref, f"input_dim mismatch: {D} vs {Dref}"
    w1p, b1p, w2p, b2p = prepared["w1p"], prepared["b1p"], prepared["w2p"], prepared["b2p"]
    Dp, NBp = w1p.shape
    Cp = w2p.shape[1]

    TB, Bp = _choose_batch_tile(B, batch_tile)

    # Skip the pad pass over x when shapes already align; the in-kernel bf16 cast is free on
    # the VPU. When padding is unavoidable, cast to bf16 in the same pass to halve its traffic.
    if Bp == B and Dp == D:
        xp = x
    else:
        xp = jnp.zeros((Bp, Dp), jnp.bfloat16).at[:B, :D].set(x.astype(jnp.bfloat16))

    vmem_limit = _vmem_limit_bytes(
        TB, Dp, NBp, Cp,
        jnp.dtype(xp.dtype).itemsize,
        jnp.dtype(feature_dtype).itemsize,
        jnp.dtype(out_dtype).itemsize,
    )

    grid = (Bp // TB,)
    # Weights/biases: constant index_map -> VMEM-resident across all grid steps.
    # TODO(synk): could use pipeline_mode=pl.Buffered(1) here to drop the second weight buffer
    # on very large D/NB configs (v7x VMEM pressure); left at default buffering for portability.
    resident = lambda shape: pl.BlockSpec(shape, lambda i: (0,) * len(shape))

    out_p, f_p = pl.pallas_call(
        classblock_kernel,
        out_shape=(
            jax.ShapeDtypeStruct((Bp, Cp), out_dtype),      # sigmoid(classifier(f)), padded
            jax.ShapeDtypeStruct((Bp, NBp), feature_dtype),  # f (bottleneck features), padded
        ),
        grid=grid,
        in_specs=[
            pl.BlockSpec((TB, Dp), lambda i: (i, 0)),        # x: batch-tiled, double-buffered
            resident((Dp, NBp)),                              # W1 (BN-folded)
            resident((1, NBp)),                               # b1 (BN-folded)
            resident((NBp, Cp)),                              # W2
            resident((1, Cp)),                                # b2
        ],
        out_specs=(
            pl.BlockSpec((TB, Cp), lambda i: (i, 0)),
            pl.BlockSpec((TB, NBp), lambda i: (i, 0)),
        ),
        compiler_params=pltpu.CompilerParams(
            dimension_semantics=("parallel",),               # batch tiles shard across v7x's 2 TCs
            vmem_limit_bytes=vmem_limit,
        ),
    )(xp, w1p, b1p, w2p, b2p)

    # Only slice when it is not a no-op (avoid an extra HBM read+write pass over f/out).
    out = out_p if (Bp == B and Cp == C) else out_p[:B, :C]
    f = f_p if (Bp == B and NBp == NB) else f_p[:B, :NB]
    return out, f


# --------------------------------------------------------------------------------------
# Parameter init matching the PyTorch module
# --------------------------------------------------------------------------------------
def init_params(key, input_dim, num_bottleneck, class_num):
    k1, k2 = jax.random.split(key, 2)
    # add_block Linear: kaiming_normal_(a=0, mode='fan_out') -> std = sqrt(2 / fan_out)
    w1 = jax.random.normal(k1, (input_dim, num_bottleneck), jnp.float32) * jnp.sqrt(
        2.0 / num_bottleneck)
    b1 = jnp.zeros((1, num_bottleneck), jnp.float32)
    # BatchNorm1d: affine weight=1, bias=0; running stats at init: mean=0, var=1
    gamma = jnp.ones((1, num_bottleneck), jnp.float32)
    beta = jnp.zeros((1, num_bottleneck), jnp.float32)
    running_mean = jnp.zeros((1, num_bottleneck), jnp.float32)
    running_var = jnp.ones((1, num_bottleneck), jnp.float32)
    # classifier Linear: normal(std=0.001), bias=0
    w2 = jax.random.normal(k2, (num_bottleneck, class_num), jnp.float32) * 0.001
    b2 = jnp.zeros((1, class_num), jnp.float32)
    return dict(w1=w1, b1=b1, gamma=gamma, beta=beta,
                running_mean=running_mean, running_var=running_var,
                w2=w2, b2=b2)


if __name__ == "__main__":
    key = jax.random.PRNGKey(0)
    kx, kp = jax.random.split(key)

    B, input_dim, num_bottleneck, class_num = 8, 32, 128, 1
    x = jax.random.normal(kx, (B, input_dim), jnp.float32)
    params = init_params(kp, input_dim, num_bottleneck, class_num)

    prepared = prepare_params(params)          # one-time: BN fold + pad + bf16 cast
    out, f = classblock_forward(x, prepared)
    jax.block_until_ready((out, f))

    # Sanity check against plain-JAX f32 reference (tolerances account for bf16 matmul operands).
    h_ref = x @ params["w1"] + params["b1"]
    h_ref = (h_ref - params["running_mean"]) * jax.lax.rsqrt(
        params["running_var"] + 1e-5) * params["gamma"] + params["beta"]
    f_ref = jnp.where(h_ref >= 0, h_ref, 0.1 * h_ref)
    out_ref = jax.nn.sigmoid(f_ref @ params["w2"] + params["b2"])

    assert out.shape == (B, class_num) and f.shape == (B, num_bottleneck)
    assert jnp.allclose(f, f_ref, atol=3e-2, rtol=3e-2), float(jnp.max(jnp.abs(f - f_ref)))
    assert jnp.allclose(out, out_ref, atol=1e-2, rtol=1e-2), float(jnp.max(jnp.abs(out - out_ref)))

    print("KERNEL_OK")
</pallas_src>

<mosaic_0001>
module attributes {stable_mosaic.version = 11 : i64} {
  func.func @classblock_kernel(%arg0: i32, %arg1: memref<16x128xbf16, #tpu.memory_space<vmem>>, %arg2: memref<128x128xbf16, #tpu.memory_space<vmem>>, %arg3: memref<1x128xf32, #tpu.memory_space<vmem>>, %arg4: memref<128x128xbf16, #tpu.memory_space<vmem>>, %arg5: memref<1x128xf32, #tpu.memory_space<vmem>>, %arg6: memref<16x128xf32, #tpu.memory_space<vmem>>, %arg7: memref<16x128xf32, #tpu.memory_space<vmem>>) attributes {dimension_semantics = [#tpu.dimension_semantics<parallel>], iteration_bounds = array<i64: 1>, scalar_prefetch = 0 : i64, scratch_operands = 0 : i64, tpu.core_type = #tpu.core_type<tc>, window_params = [{transform_indices = @transform_0, window_bounds = array<i64: 16, 128>}, {pipeline_mode = #tpu.pipeline_mode<synchronous>, transform_indices = @transform_1, window_bounds = array<i64: 128, 128>}, {pipeline_mode = #tpu.pipeline_mode<synchronous>, transform_indices = @transform_2, window_bounds = array<i64: 1, 128>}, {pipeline_mode = #tpu.pipeline_mode<synchronous>, transform_indices = @transform_3, window_bounds = array<i64: 128, 128>}, {pipeline_mode = #tpu.pipeline_mode<synchronous>, transform_indices = @transform_4, window_bounds = array<i64: 1, 128>}, {transform_indices = @transform_5, window_bounds = array<i64: 16, 128>}, {transform_indices = @transform_6, window_bounds = array<i64: 16, 128>}]} {
    %c0 = arith.constant 0 : index
    %c0_0 = arith.constant 0 : index
    %0 = vector.load %arg1[%c0, %c0_0] : memref<16x128xbf16, #tpu.memory_space<vmem>>, vector<16x128xbf16>
    %c0_1 = arith.constant 0 : index
    %c0_2 = arith.constant 0 : index
    %1 = vector.load %arg2[%c0_1, %c0_2] : memref<128x128xbf16, #tpu.memory_space<vmem>>, vector<128x128xbf16>
    %cst = arith.constant dense<0.000000e+00> : vector<16x128xf32>
    %2 = tpu.matmul %0, %1, %cst {dimension_numbers = #tpu.dot_dimension_numbers<[1], [0], [0], [1], [0, 0, 1, 1], [], []>} : vector<16x128xbf16>, vector<128x128xbf16>, vector<16x128xf32> -> vector<16x128xf32>
    %c0_3 = arith.constant 0 : index
    %c0_4 = arith.constant 0 : index
    %3 = vector.load %arg3[%c0_3, %c0_4] : memref<1x128xf32, #tpu.memory_space<vmem>>, vector<1x128xf32>
    %4 = vector.broadcast %3 : vector<1x128xf32> to vector<16x128xf32>
    %5 = arith.addf %2, %4 : vector<16x128xf32>
    %cst_5 = arith.constant 0.000000e+00 : f32
    %6 = vector.broadcast %cst_5 : f32 to vector<16x128xf32>
    %7 = arith.cmpf oge, %5, %6 : vector<16x128xf32>
    %cst_6 = arith.constant 1.000000e-01 : f32
    %8 = vector.broadcast %cst_6 : f32 to vector<16x128xf32>
    %9 = arith.mulf %8, %5 : vector<16x128xf32>
    %10 = arith.select %7, %5, %9 : vector<16x128xi1>, vector<16x128xf32>
    %c0_7 = arith.constant 0 : index
    %c0_8 = arith.constant 0 : index
    %11 = vector.load %arg7[%c0_7, %c0_8] : memref<16x128xf32, #tpu.memory_space<vmem>>, vector<16x128xf32>
    tpu.vector_store %arg7[%c0_7, %c0_8], %10 {strides = array<i32>} : memref<16x128xf32, #tpu.memory_space<vmem>>, vector<16x128xf32>,
    %12 = arith.truncf %10 : vector<16x128xf32> to vector<16x128xbf16>
    %c0_9 = arith.constant 0 : index
    %c0_10 = arith.constant 0 : index
    %13 = vector.load %arg4[%c0_9, %c0_10] : memref<128x128xbf16, #tpu.memory_space<vmem>>, vector<128x128xbf16>
    %cst_11 = arith.constant dense<0.000000e+00> : vector<16x128xf32>
    %14 = tpu.matmul %12, %13, %cst_11 {dimension_numbers = #tpu.dot_dimension_numbers<[1], [0], [0], [1], [0, 0, 1, 1], [], []>} : vector<16x128xbf16>, vector<128x128xbf16>, vector<16x128xf32> -> vector<16x128xf32>
    %c0_12 = arith.constant 0 : index
    %c0_13 = arith.constant 0 : index
    %15 = vector.load %arg5[%c0_12, %c0_13] : memref<1x128xf32, #tpu.memory_space<vmem>>, vector<1x128xf32>
    %16 = vector.broadcast %15 : vector<1x128xf32> to vector<16x128xf32>
    %17 = arith.addf %14, %16 : vector<16x128xf32>
    %cst_14 = arith.constant 0.000000e+00 : f32
    %18 = vector.broadcast %cst_14 : f32 to vector<16x128xf32>
    %19 = arith.subf %18, %17 : vector<16x128xf32>
    %20 = math.exp %19 : vector<16x128xf32>
    %cst_15 = arith.constant 1.000000e+00 : f32
    %21 = vector.broadcast %cst_15 : f32 to vector<16x128xf32>
    %22 = arith.addf %21, %20 : vector<16x128xf32>
    %23 = tpu.reciprocal %22 {approx = true} : vector<16x128xf32> -> vector<16x128xf32>
    %c0_16 = arith.constant 0 : index
    %c0_17 = arith.constant 0 : index
    %24 = vector.load %arg6[%c0_16, %c0_17] : memref<16x128xf32, #tpu.memory_space<vmem>>, vector<16x128xf32>
    tpu.vector_store %arg6[%c0_16, %c0_17], %23 {strides = array<i32>} : memref<16x128xf32, #tpu.memory_space<vmem>>, vector<16x128xf32>,
    return
  }
  func.func @transform_0(%arg0: i32) -> (i32, i32) {
    %c0_i32 = arith.constant 0 : i32
    %c0_i32_0 = arith.constant 0 : i32
    return %arg0, %c0_i32 : i32, i32
  }
  func.func @transform_1(%arg0: i32) -> (i32, i32) {
    %c0_i32 = arith.constant 0 : i32
    %c0_i32_0 = arith.constant 0 : i32
    %c0_i32_1 = arith.constant 0 : i32
    return %c0_i32, %c0_i32_0 : i32, i32
  }
  func.func @transform_2(%arg0: i32) -> (i32, i32) {
    %c0_i32 = arith.constant 0 : i32
    %c0_i32_0 = arith.constant 0 : i32
    %c0_i32_1 = arith.constant 0 : i32
    return %c0_i32, %c0_i32_0 : i32, i32
  }
  func.func @transform_3(%arg0: i32) -> (i32, i32) {
    %c0_i32 = arith.constant 0 : i32
    %c0_i32_0 = arith.constant 0 : i32
    %c0_i32_1 = arith.constant 0 : i32
    return %c0_i32, %c0_i32_0 : i32, i32
  }
  func.func @transform_4(%arg0: i32) -> (i32, i32) {
    %c0_i32 = arith.constant 0 : i32
    %c0_i32_0 = arith.constant 0 : i32
    %c0_i32_1 = arith.constant 0 : i32
    return %c0_i32, %c0_i32_0 : i32, i32
  }
  func.func @transform_5(%arg0: i32) -> (i32, i32) {
    %c0_i32 = arith.constant 0 : i32
    %c0_i32_0 = arith.constant 0 : i32
    return %arg0, %c0_i32 : i32, i32
  }
  func.func @transform_6(%arg0: i32) -> (i32, i32) {
    %c0_i32 = arith.constant 0 : i32
    %c0_i32_0 = arith.constant 0 : i32
    return %arg0, %c0_i32 : i32, i32
  }
}

</mosaic_0001>

<bundles_post_ra>
// kernel: tpu_custom_call.1
= control target key start
LH: loop header
LB: loop body
LE: loop exit
PB: predicated region body
PF: predicated region fallthrough
CT: control target
= control target key end

     0   :  { %12 = vsyncpa [#allocation3], 0  ;;  %s647_s0 = inlined_call_operand.hbm [shape: bf16[16,128], index: 0, kind: input, shape index: {}]   ;;  %s648_s1 = inlined_call_operand.hbm [shape: bf16[128,128], index: 1, kind: input, shape index: {}]   ;;  %s649_s2 = inlined_call_operand.vmem [shape: f32[1,128], index: 2, kind: input, shape index: {}]   ;;  %s650_s3 = inlined_call_operand.hbm [shape: bf16[128,128], index: 3, kind: input, shape index: {}]   ;;  %s651_s4 = inlined_call_operand.vmem [shape: f32[1,128], index: 4, kind: input, shape index: {}]   ;;  %s652_s5 = inlined_call_operand.hbm [shape: f32[16,128], index: 5, kind: output, shape index: {0}]   ;;  %s653_s6 = inlined_call_operand.hbm [shape: f32[16,128], index: 6, kind: output, shape index: {1}]  }
   0x1   :  { %13 = vsyncpa [#allocation6], 0 }
   0x2   :  { %14 = vsyncpa [#allocation4], 0 }
   0x3   :  { %15 = vsyncpa [#allocation10], 0  ;;  %s574_s21 = smov [#allocation5]   ;;  %s575_s23 = smov [#allocation2]  }
   0x4   :  { %s33_s22 = sshll.u32 %s574_s21, 4  ;;  %s21_s24 = sshll.u32 %s575_s23, 4  ;;  %s34_s22 = int_to_ptr.vmem [resolvable:$true] %s33_s22  ;;  %s22_s24 = int_to_ptr.vmem [resolvable:$true] %s21_s24 }
   0x5   :  { %s474_s25 = scalar_lea.vmem %s34_s22, 1024  ;;  %p479_p1 = scmp.lt.s32.totalorder %s34_s22, %s34_s22 }
   0x6   :  { %p475_p0 = scmp.ne.s32.totalorder %s34_s22, %s474_s25  ;;  %p480_p2 = scmp.lt.s32.totalorder %s474_s25, %s474_s25 }
   0x8   :  { %p481_p3 = por %p480_p2, %p479_p1 }
   0xa   :  { %p482_p4 = pnand %p481_p3, %p475_p0 }
   0xc   :  { %485 = shalt.err (!%p482_p4)
}
   0xd   :  { %s576_s26 = smov 64   ;;  %s577_s27 = smov 4  }
   0xe   :  { %39 = dma.hbm_to_vmem [thread:$0]  %s648_s1, 1024, %s34_s22, [#allocation6], %s576_s26, %s576_s26, %s577_s27  }
   0xf   :  { %s494_s30 = scalar_lea.vmem %s22_s24, 128  ;;  %p499_p6 = scmp.lt.s32.totalorder %s22_s24, %s22_s24 }
  0x10   :  { %p495_p5 = scmp.ne.s32.totalorder %s22_s24, %s494_s30  ;;  %p500_p7 = scmp.lt.s32.totalorder %s494_s30, %s494_s30 }
  0x12   :  { %p501_p8 = por %p500_p7, %p499_p6 }
  0x14   :  { %p502_p9 = pnand %p501_p8, %p495_p5 }
  0x16   :  { %505 = shalt.err (!%p502_p9)
}
  0x17   :  { %27 = dma.hbm_to_vmem [thread:$0]  %s647_s0, 128, %s22_s24, [#allocation3], %s576_s26, %s576_s26, %s577_s27  }
  0x18   :  { %s578_s9 = smov [#allocation7]  }
  0x19   :  { %s47_s10 = sshll.u32 %s578_s9, 4  ;;  %s48_s10 = int_to_ptr.vmem [resolvable:$true] %s47_s10 }
  0x1a   :  { %s514_s11 = scalar_lea.vmem %s48_s10, 1024  ;;  %p519_p11 = scmp.lt.s32.totalorder %s48_s10, %s48_s10 }
  0x1b   :  { %p515_p10 = scmp.ne.s32.totalorder %s48_s10, %s514_s11  ;;  %p520_p12 = scmp.lt.s32.totalorder %s514_s11, %s514_s11 }
  0x1d   :  { %p521_p13 = por %p520_p12, %p519_p11 }
  0x1f   :  { %p522_p0 = pnand %p521_p13, %p515_p10 }
  0x21   :  { %525 = shalt.err (!%p522_p0)
}
  0x22   :  { %53 = dma.hbm_to_vmem [thread:$0]  %s650_s3, 1024, %s48_s10, [#allocation6], %s576_s26, %s576_s26, %s577_s27  }
  0x23   :  { %566 = dma.done.wait [#allocation3], 128  }
  0x24   :  { %567 = vsyncadd [#allocation3], 4294967168 }
  0x25   :  { %568 = dma.done.wait [#allocation6], 2048  }
  0x26   :  { %569 = vsyncadd [#allocation6], 4294965248  ;;  %v579_v0 = vmov 0.0   ;;  %vm580_vm0 = vmmov 0   ;;  %v441_v1 = vld [vmem:[#allocation5 + $0x38] sm:$0xff]   ;;  %v442_v2 = vld [vmem:[#allocation5 + $0x30] sm:$0xff]  }
  0x27   :  { %390 = vmatprep.subr.bf16.mxu0 %v579_v0  ;;  %406 = vmatprep.mubr.msk.bf16.mxu0 %vm580_vm0, %v579_v0  ;;  %v443_v3 = vld [vmem:[#allocation5 + $0x28] sm:$0xff]   ;;  %v450_v4 = vld [vmem:[#allocation7 + $0x38] sm:$0xff]   ;;  %v444_v5 = vld [vmem:[#allocation5 + $0x20] sm:$0xff]   ;;  %s581_s13 = smov [#allocation9]  }
  0x28   :  { %410 = vmatprep.subr.bf16.mxu1 %v579_v0  ;;  %426 = vmatprep.mubr.msk.bf16.mxu1 %vm580_vm0, %v579_v0  ;;  %v451_v6 = vld [vmem:[#allocation7 + $0x30] sm:$0xff]   ;;  %v445_v7 = vld [vmem:[#allocation5 + $0x18] sm:$0xff]   ;;  %v452_v8 = vld [vmem:[#allocation7 + $0x28] sm:$0xff]   ;;  %s336_s14 = sshll.u32 %s581_s13, 4  ;;  %s337_s14 = int_to_ptr.vmem [resolvable:$true] %s336_s14 }
  0x29   :  { %391 = vmatpush3.bf16.msra.mxu0 %v441_v1  ;;  %411 = vmatpush3.bf16.msra.mxu1 %v450_v4  ;;  %v446_v9 = vld [vmem:[#allocation5 + $0x10] sm:$0xff]   ;;  %v453_v10 = vld [vmem:[#allocation7 + $0x20] sm:$0xff]   ;;  %v447_v11 = vld [vmem:[#allocation5 + $0x8] sm:$0xff]   ;;  %p531_p2 = scmp.lt.s32.totalorder %s337_s14, %s337_s14 }
  0x2a   :  { %392 = vmatprep.subr.bf16.mxu0 %v579_v0  ;;  %412 = vmatprep.subr.bf16.mxu1 %v579_v0  ;;  %v454_v12 = vld [vmem:[#allocation7 + $0x18] sm:$0xff]   ;;  %v448_v13 = vld [vmem:[#allocation5] sm:$0xff]   ;;  %v455_v15 = vld [vmem:[#allocation7 + $0x10] sm:$0xff]  }
  0x2b   :  { %v449_v14 = vld [vmem:[#allocation2] sm:$0xff]   ;;  %v456_v16 = vld [vmem:[#allocation7 + $0x8] sm:$0xff]   ;;  %v457_v17 = vld [vmem:[#allocation7] sm:$0xff]  }
  0x2c   :  { %v353_v18 = vld [vmem:[%s649_s2] ss:$0 sm:$0xff]  ;;  %s526_s2 = scalar_lea.vmem %s337_s14, 256 }
  0x2d   :  { %393 = vmatpush3.bf16.msra.mxu0 %v442_v2  ;;  %413 = vmatpush3.bf16.msra.mxu1 %v451_v6  ;;  %p527_p1 = scmp.ne.s32.totalorder %s337_s14, %s526_s2  ;;  %p532_p3 = scmp.lt.s32.totalorder %s526_s2, %s526_s2 }
  0x2e   :  { %394 = vmatprep.subr.bf16.mxu0 %v579_v0  ;;  %414 = vmatprep.subr.bf16.mxu1 %v579_v0 }
  0x2f   :  { %p533_p4 = por %p532_p3, %p531_p2 }
  0x31   :  { %395 = vmatpush3.bf16.msra.mxu0 %v443_v3  ;;  %415 = vmatpush3.bf16.msra.mxu1 %v452_v8  ;;  %p534_p5 = pnand %p533_p4, %p527_p1 }
  0x32   :  { %396 = vmatprep.subr.bf16.mxu0 %v579_v0  ;;  %416 = vmatprep.subr.bf16.mxu1 %v579_v0 }
  0x35   :  { %397 = vmatpush3.bf16.msra.mxu0 %v444_v5  ;;  %417 = vmatpush3.bf16.msra.mxu1 %v453_v10 }
  0x36   :  { %398 = vmatprep.subr.bf16.mxu0 %v579_v0  ;;  %418 = vmatprep.subr.bf16.mxu1 %v579_v0 }
  0x39   :  { %399 = vmatpush3.bf16.msra.mxu0 %v445_v7  ;;  %419 = vmatpush3.bf16.msra.mxu1 %v454_v12 }
  0x3a   :  { %400 = vmatprep.subr.bf16.mxu0 %v579_v0  ;;  %420 = vmatprep.subr.bf16.mxu1 %v579_v0 }
  0x3d   :  { %401 = vmatpush3.bf16.msra.mxu0 %v446_v9  ;;  %421 = vmatpush3.bf16.msra.mxu1 %v455_v15 }
  0x3e   :  { %402 = vmatprep.subr.bf16.mxu0 %v579_v0  ;;  %422 = vmatprep.subr.bf16.mxu1 %v579_v0 }
  0x41   :  { %403 = vmatpush3.bf16.msra.mxu0 %v447_v11  ;;  %423 = vmatpush3.bf16.msra.mxu1 %v456_v16 }
  0x42   :  { %404 = vmatprep.subr.bf16.mxu0 %v579_v0  ;;  %424 = vmatprep.subr.bf16.mxu1 %v579_v0 }
  0x45   :  { %405 = vmatpush3.bf16.msra.mxu0 %v448_v13  ;;  %425 = vmatpush3.bf16.msra.mxu1 %v457_v17 }
  0x48   :  { %407 = vmatmul.mubr.bf16.vlgmr.msra.gmra.mxu0 %v449_v14 }
 0x108   :  { %v179_v19 = vpop.f32.mrf.mxu0 }
 0x109   :  { %v180_v20 = vadd.f32 %v353_v18, %v179_v19 }
 0x10a   :  { %v408_v21 = vpop.f32.mrf.mxu0 }
 0x10b   :  { %vm186_vm1 = vcmp.ge.f32.partialorder %v180_v20, 0.0  ;;  %v188_v22 = vmul.f32 0.1, %v180_v20 }
 0x10c   :  { %v182_v23 = vpop.f32.mrf.mxu0 }
 0x10d   :  { %v183_v24 = vadd.f32 %v353_v18, %v182_v23  ;;  %v190_v25 = vsel %vm186_vm1, %v180_v20, %v188_v22 }
 0x10e   :  { %v409_v26 = vpop.f32.mrf.mxu0  ;;  %192 = vst [vmem:[#allocation9] sm:$0xff] %v190_v25 }
 0x10f   :  { %vm187_vm2 = vcmp.ge.f32.partialorder %v183_v24, 0.0  ;;  %v189_v27 = vmul.f32 0.1, %v183_v24 }
 0x111   :  { %v191_v28 = vsel %vm187_vm2, %v183_v24, %v189_v27 }
 0x112   :  { %193 = vst [vmem:[#allocation9 + $0x8] sm:$0xff] %v191_v28  ;;  %v194_v29 = vpack.c.bf16 %v191_v28, %v190_v25 }
 0x114   :  { %427 = vmatmul.mubr.bf16.vlgmr.msra.gmra.mxu1 %v194_v29 }
 0x115   :  { %537 = shalt.err (!%p534_p5)
}
 0x116   :  { %s582_s15 = smov 128   ;;  %s583_s16 = smov 8   ;;  %v363_v30 = vld [vmem:[%s651_s4] ss:$0 sm:$0xff] }
 0x117   :  { %342 = dma.vmem_to_hbm [thread:$0]  %s337_s14, 256, %s653_s6, [#allocation10], %s582_s15, %s582_s15, %s583_s16  }
 0x118   :  { %s584_s4 = smov [#allocation8]  }
 0x119   :  { %s324_s6 = sshll.u32 %s584_s4, 4  ;;  %s325_s6 = int_to_ptr.vmem [resolvable:$true] %s324_s6 }
 0x11a   :  { %s546_s21 = scalar_lea.vmem %s325_s6, 256  ;;  %p551_p7 = scmp.lt.s32.totalorder %s325_s6, %s325_s6 }
 0x11b   :  { %p547_p6 = scmp.ne.s32.totalorder %s325_s6, %s546_s21  ;;  %p552_p8 = scmp.lt.s32.totalorder %s546_s21, %s546_s21 }
 0x11d   :  { %p553_p9 = por %p552_p8, %p551_p7 }
 0x11f   :  { %p554_p10 = pnand %p553_p9, %p547_p6 }
 0x1d4   :  { %v300_v31 = vpop.f32.mrf.mxu1 }
 0x1d5   :  { %v301_v32 = vadd.f32 %v363_v30, %v300_v31 }
 0x1d6   :  { %v428_v33 = vpop.f32.mrf.mxu1 }
 0x1d7   :  { %v307_v34 = vsub.f32 0.0, %v301_v32 }
 0x1d8   :  { %v303_v35 = vpop.f32.mrf.mxu1 }
 0x1d9   :  { %v309_v36 = vmul.f32 1.442695, %v307_v34  ;;  %v304_v37 = vadd.f32 %v363_v30, %v303_v35 }
 0x1da   :  { %v429_v38 = vpop.f32.mrf.mxu1 }
 0x1db   :  { %458 = vpow2.f32 %v309_v36  ;;  %v308_v39 = vsub.f32 0.0, %v304_v37 }
 0x1dd   :  { %v311_v40 = vmul.f32 1.442695, %v308_v39 }
 0x1df   :  { %460 = vpow2.f32 %v311_v40 }
 0x1e8   :  { %v459_v41 = vpop.eup %458 }
 0x1e9   :  { %v313_v42 = vadd.f32 1.0, %v459_v41 }
 0x1eb   :  { %462 = vrcp.f32 %v313_v42 }
 0x1ec   :  { %v461_v43 = vpop.eup %460 }
 0x1ed   :  { %v314_v44 = vadd.f32 1.0, %v461_v43 }
 0x1ef   :  { %464 = vrcp.f32 %v314_v44 }
 0x1f8   :  { %v463_v45 = vpop.eup %462 }
 0x1f9   :  { %317 = vst [vmem:[#allocation8] sm:$0xff] %v463_v45 }
 0x1fc   :  { %v465_v46 = vpop.eup %464 }
 0x1fd   :  { %318 = vst [vmem:[#allocation8 + $0x8] sm:$0xff] %v465_v46 }
 0x1fe   :  { %557 = shalt.err (!%p554_p10)
}
 0x1ff   :  { %330 = dma.vmem_to_hbm [thread:$0]  %s325_s6, 256, %s652_s5, [#allocation4], %s582_s15, %s582_s15, %s583_s16  }
 0x200   :  { %570 = dma.done.wait [#allocation4], 256  }
 0x201   :  { %571 = vsyncadd [#allocation4], 4294967040 }
 0x202   :  { %572 = dma.done.wait [#allocation10], 256  }
 0x203   :  { %573 = vsyncadd [#allocation10], 4294967040 }
 0x204   :  { %349 = vsyncpa [#allocation3], 1 }
 0x205   :  { %350 = vsyncpa [#allocation6], 1 }
 0x206   :  { %351 = vsyncpa [#allocation4], 1 }
 0x207   :  { %352 = vsyncpa [#allocation10], 1 }

</bundles_post_ra>
